<compile_context>
chip_gen: v7x
topology: tpu7x:2x2x1
jax: 0.10.0
libtpu: 0.0.40
codegen_flags: <defaults>
</compile_context>

<pallas_src>
import functools

import jax
import jax.numpy as jnp
from jax.experimental import pallas as pl
from jax.experimental.pallas import tpu as pltpu

_LANES = 128


def _soft_dice_sums_kernel(params_ref, pred_ref, tgt_ref, acc_ref, *,
                           block_rows, steps, full_rows, tail, masked):
    c = pl.program_id(0)   # chunk (parallel) axis
    i = pl.program_id(1)   # streaming (arbitrary / reduction) axis

    @pl.when(i == 0)
    def _():
        acc_ref[...] = jnp.zeros_like(acc_ref)

    threshold = params_ref[0]
    steepness = params_ref[1]

    x = pred_ref[...].astype(jnp.float32)
    t = tgt_ref[...].astype(jnp.float32)

    # contFunction: sigmoid((x - threshold) * steepness), computed via tanh
    # (one EUP op per vreg instead of exp + divide).
    z = (x - threshold) * (0.5 * steepness)
    probs = 0.5 * jnp.tanh(z) + 0.5

    if masked:
        # Mask rows/lanes beyond the true element count (covers the lane
        # alignment pad, partially out-of-bounds blocks and clamped steps).
        row0 = (c * steps + i) * block_rows
        g_row = row0 + jax.lax.broadcasted_iota(jnp.int32, x.shape, 0)
        lane = jax.lax.broadcasted_iota(jnp.int32, x.shape, 1)
        valid = jnp.logical_and(
            g_row < full_rows,
            jnp.logical_or(g_row < full_rows - 1, lane < tail))
        probs = jnp.where(valid, probs, 0.0)
        t = jnp.where(valid, t, 0.0)

    def fold(v):
        # (block_rows, 128) -> (8, 128): pure VPU adds, no cross-lane XLU
        # reduction in the steady-state loop.
        return v.reshape(block_rows // 8, 8, _LANES).sum(axis=0)

    acc_ref[0] = acc_ref[0] + fold(probs * t)   # intersection partials
    acc_ref[1] = acc_ref[1] + fold(probs)       # sum(probs) partials
    acc_ref[2] = acc_ref[2] + fold(t)           # sum(targets) partials


def soft_dice_loss(predictions, targets, threshold=None, *,
                   default_threshold=0.5, epsilon=1e-6, steepness=500.0,
                   block_rows=1024):
    if threshold is None:
        threshold = default_threshold

    pred_flat = predictions.reshape(-1)
    tgt_flat = targets.reshape(-1)
    n = pred_flat.shape[0]

    # Lane-dense 2-D view.  Only pad to the next lane multiple (and to a
    # minimum of 32 rows for tiny inputs); padded values are masked in-kernel.
    full_rows = pl.cdiv(n, _LANES)           # rows that contain real data
    padded_rows = max(full_rows, 32)
    pad = padded_rows * _LANES - n
    if pad:
        pred_flat = jnp.pad(pred_flat, (0, pad))
        tgt_flat = jnp.pad(tgt_flat, (0, pad))
    pred2d = pred_flat.reshape(padded_rows, _LANES)
    tgt2d = tgt_flat.reshape(padded_rows, _LANES)

    # Tile rows: multiple of 32 satisfies the sublane-tile constraint for
    # f32 / bf16 / int8 inputs and keeps the in-kernel fold exact.
    br = max(32, (int(block_rows) + 31) // 32 * 32)
    br = min(br, (padded_rows // 32) * 32)
    grid_rows = pl.cdiv(padded_rows, br)

    # Leading parallel axis: two chunks so v7x can use both TensorCores
    # (harmless serial iteration on v5e / v6e).
    num_chunks = 2 if grid_rows >= 2 else 1
    steps = pl.cdiv(grid_rows, num_chunks)

    tail = n - (full_rows - 1) * _LANES       # valid lanes in last data row
    masked = (num_chunks * steps * br * _LANES) != n

    params = jnp.array([threshold, steepness], dtype=jnp.float32)

    kernel = functools.partial(
        _soft_dice_sums_kernel, block_rows=br, steps=steps,
        full_rows=full_rows, tail=tail, masked=masked)

    def data_map(c, i):
        # Clamp so a (rare) fully-out-of-range step just re-reads the last
        # block; its contribution is masked to zero inside the kernel.
        return (jnp.minimum(c * steps + i, grid_rows - 1), 0)

    sums = pl.pallas_call(
        kernel,
        out_shape=jax.ShapeDtypeStruct((num_chunks * 3, 8, _LANES), jnp.float32),
        grid_spec=pltpu.PrefetchScalarGridSpec(
            num_scalar_prefetch=0,
            grid=(num_chunks, steps),
            in_specs=[
                pl.BlockSpec(memory_space=pltpu.MemorySpace.SMEM),  # [thr, steep]
                pl.BlockSpec((br, _LANES), data_map),
                pl.BlockSpec((br, _LANES), data_map),
            ],
            out_specs=pl.BlockSpec((3, 8, _LANES), lambda c, i: (c, 0, 0)),
        ),
        compiler_params=pltpu.CompilerParams(
            dimension_semantics=("parallel", "arbitrary"),
            vmem_limit_bytes=32 * 1024 * 1024),
    )(params, pred2d, tgt2d)

    # Tiny epilogue in plain JAX: final cross-lane reduce + dice arithmetic.
    partials = sums.reshape(num_chunks, 3, 8, _LANES).sum(axis=(0, 2, 3))
    intersection = partials[0]
    union = partials[1] + partials[2]
    dice_coeff = (2.0 * intersection + epsilon) / (union + epsilon)
    return 1.0 - dice_coeff


def _reference_soft_dice_loss(predictions, targets, threshold=None, *,
                              default_threshold=0.5, epsilon=1e-6,
                              steepness=500.0):
    if threshold is None:
        threshold = default_threshold
    probs = jax.nn.sigmoid(
        (predictions.astype(jnp.float32) - threshold) * steepness).reshape(-1)
    t = targets.astype(jnp.float32).reshape(-1)
    intersection = jnp.sum(probs * t)
    union = jnp.sum(probs) + jnp.sum(t)
    dice_coeff = (2.0 * intersection + epsilon) / (union + epsilon)
    return 1.0 - dice_coeff


if __name__ == "__main__":
    key = jax.random.PRNGKey(0)

    cases = [
        # (NCHW shape, block_rows)
        ((2, 4, 16, 16), 1024),   # 128-multiple element count, single block
        ((2, 3, 7, 11), 1024),    # ragged tail (462 elems): lane-mask path
        ((2, 4, 40, 16), 32),     # multi-step grid + 2 parallel chunks
    ]
    for idx, (shape, br) in enumerate(cases):
        k1, k2 = jax.random.split(jax.random.fold_in(key, idx))
        predictions = jax.random.uniform(k1, shape, dtype=jnp.float32)
        targets = (jax.random.uniform(k2, shape) > 0.5).astype(jnp.float32)

        loss = jax.block_until_ready(
            soft_dice_loss(predictions, targets, block_rows=br))
        ref = jax.block_until_ready(
            _reference_soft_dice_loss(predictions, targets))
        assert jnp.allclose(loss, ref, atol=1e-5, rtol=1e-5), (shape, loss, ref)

    print("KERNEL_OK")
</pallas_src>

<mosaic_0001>
module attributes {stable_mosaic.version = 11 : i64} {
  func.func @_soft_dice_sums_kernel(%arg0: i32, %arg1: i32, %arg2: memref<2xf32, #tpu.memory_space<smem>>, %arg3: memref<32x128xf32, #tpu.memory_space<vmem>>, %arg4: memref<32x128xf32, #tpu.memory_space<vmem>>, %arg5: memref<3x8x128xf32, #tpu.memory_space<vmem>>) attributes {dimension_semantics = [#tpu.dimension_semantics<parallel>, #tpu.dimension_semantics<arbitrary>], iteration_bounds = array<i64: 1, 1>, scalar_prefetch = 0 : i64, scratch_operands = 0 : i64, tpu.core_type = #tpu.core_type<tc>, window_params = [{transform_indices = @transform_0, window_bounds = array<i64: 2>}, {transform_indices = @transform_1, window_bounds = array<i64: 32, 128>}, {transform_indices = @transform_2, window_bounds = array<i64: 32, 128>}, {transform_indices = @transform_3, window_bounds = array<i64: 3, 8, 128>}]} {
    %c0_i32 = arith.constant 0 : i32
    %0 = arith.cmpi eq, %arg1, %c0_i32 : i32
    %1 = arith.extui %0 : i1 to i32
    %c0_i32_0 = arith.constant 0 : i32
    %2 = arith.cmpi ne, %1, %c0_i32_0 : i32
    scf.if %2 {
      %cst_29 = arith.constant 0.000000e+00 : f32
      %61 = vector.broadcast %cst_29 : f32 to vector<3x8x128xf32>
      %c0_30 = arith.constant 0 : index
      %c0_31 = arith.constant 0 : index
      %c0_32 = arith.constant 0 : index
      %62 = vector.load %arg5[%c0_30, %c0_31, %c0_32] : memref<3x8x128xf32, #tpu.memory_space<vmem>>, vector<3x8x128xf32>
      tpu.vector_store %arg5[%c0_30, %c0_31, %c0_32], %61 {strides = array<i32>} : memref<3x8x128xf32, #tpu.memory_space<vmem>>, vector<3x8x128xf32>,
    } else {
    }
    %c0 = arith.constant 0 : index
    %3 = memref.load %arg2[%c0] : memref<2xf32, #tpu.memory_space<smem>>
    %c1 = arith.constant 1 : index
    %4 = memref.load %arg2[%c1] : memref<2xf32, #tpu.memory_space<smem>>
    %c0_1 = arith.constant 0 : index
    %c0_2 = arith.constant 0 : index
    %5 = vector.load %arg3[%c0_1, %c0_2] : memref<32x128xf32, #tpu.memory_space<vmem>>, vector<32x128xf32>
    %c0_3 = arith.constant 0 : index
    %c0_4 = arith.constant 0 : index
    %6 = vector.load %arg4[%c0_3, %c0_4] : memref<32x128xf32, #tpu.memory_space<vmem>>, vector<32x128xf32>
    %7 = vector.broadcast %3 : f32 to vector<32x128xf32>
    %8 = arith.subf %5, %7 : vector<32x128xf32>
    %cst = arith.constant 5.000000e-01 : f32
    %9 = arith.mulf %cst, %4 : f32
    %10 = vector.broadcast %9 : f32 to vector<32x128xf32>
    %11 = arith.mulf %8, %10 : vector<32x128xf32>
    %12 = math.tanh %11 : vector<32x128xf32>
    %cst_5 = arith.constant 5.000000e-01 : f32
    %13 = vector.broadcast %cst_5 : f32 to vector<32x128xf32>
    %14 = arith.mulf %13, %12 : vector<32x128xf32>
    %cst_6 = arith.constant 5.000000e-01 : f32
    %15 = vector.broadcast %cst_6 : f32 to vector<32x128xf32>
    %16 = arith.addf %14, %15 : vector<32x128xf32>
    %c1_i32 = arith.constant 1 : i32
    %17 = arith.muli %arg0, %c1_i32 : i32
    %18 = arith.addi %17, %arg1 : i32
    %c32_i32 = arith.constant 32 : i32
    %19 = arith.muli %18, %c32_i32 : i32
    %20 = tpu.iota {dimensions = array<i32: 0>} : vector<32x128xi32>
    %21 = vector.broadcast %19 : i32 to vector<32x128xi32>
    %22 = arith.addi %21, %20 : vector<32x128xi32>
    %23 = tpu.iota {dimensions = array<i32: 1>} : vector<32x128xi32>
    %c16_i32 = arith.constant 16 : i32
    %24 = vector.broadcast %c16_i32 : i32 to vector<32x128xi32>
    %25 = arith.cmpi slt, %22, %24 : vector<32x128xi32>
    %c15_i32 = arith.constant 15 : i32
    %26 = vector.broadcast %c15_i32 : i32 to vector<32x128xi32>
    %27 = arith.cmpi slt, %22, %26 : vector<32x128xi32>
    %c128_i32 = arith.constant 128 : i32
    %28 = vector.broadcast %c128_i32 : i32 to vector<32x128xi32>
    %29 = arith.cmpi slt, %23, %28 : vector<32x128xi32>
    %30 = arith.ori %27, %29 : vector<32x128xi1>
    %31 = arith.andi %25, %30 : vector<32x128xi1>
    %cst_7 = arith.constant 0.000000e+00 : f32
    %32 = vector.broadcast %cst_7 : f32 to vector<32x128xf32>
    %33 = arith.select %31, %16, %32 : vector<32x128xi1>, vector<32x128xf32>
    %cst_8 = arith.constant 0.000000e+00 : f32
    %34 = vector.broadcast %cst_8 : f32 to vector<32x128xf32>
    %35 = arith.select %31, %6, %34 : vector<32x128xi1>, vector<32x128xf32>
    %c0_9 = arith.constant 0 : index
    %c0_10 = arith.constant 0 : index
    %c0_11 = arith.constant 0 : index
    %36 = vector.load %arg5[%c0_9, %c0_10, %c0_11] : memref<3x8x128xf32, #tpu.memory_space<vmem>>, vector<1x8x128xf32>
    %37 = vector.shape_cast %36 : vector<1x8x128xf32> to vector<8x128xf32>
    %38 = arith.mulf %33, %35 : vector<32x128xf32>
    %39 = vector.shape_cast %38 : vector<32x128xf32> to vector<4x8x128xf32>
    %cst_12 = arith.constant dense<0.000000e+00> : vector<8x128xf32>
    %40 = vector.multi_reduction <add>, %39, %cst_12 [0] : vector<4x8x128xf32> to vector<8x128xf32>
    %41 = arith.addf %37, %40 : vector<8x128xf32>
    %c0_13 = arith.constant 0 : index
    %c0_14 = arith.constant 0 : index
    %c0_15 = arith.constant 0 : index
    %42 = vector.load %arg5[%c0_13, %c0_14, %c0_15] : memref<3x8x128xf32, #tpu.memory_space<vmem>>, vector<1x8x128xf32>
    %43 = vector.shape_cast %42 : vector<1x8x128xf32> to vector<8x128xf32>
    %44 = vector.shape_cast %41 : vector<8x128xf32> to vector<1x8x128xf32>
    tpu.vector_store %arg5[%c0_13, %c0_14, %c0_15], %44 {strides = array<i32>} : memref<3x8x128xf32, #tpu.memory_space<vmem>>, vector<1x8x128xf32>,
    %c1_16 = arith.constant 1 : index
    %c0_17 = arith.constant 0 : index
    %c0_18 = arith.constant 0 : index
    %45 = vector.load %arg5[%c1_16, %c0_17, %c0_18] : memref<3x8x128xf32, #tpu.memory_space<vmem>>, vector<1x8x128xf32>
    %46 = vector.shape_cast %45 : vector<1x8x128xf32> to vector<8x128xf32>
    %47 = vector.shape_cast %33 : vector<32x128xf32> to vector<4x8x128xf32>
    %cst_19 = arith.constant dense<0.000000e+00> : vector<8x128xf32>
    %48 = vector.multi_reduction <add>, %47, %cst_19 [0] : vector<4x8x128xf32> to vector<8x128xf32>
    %49 = arith.addf %46, %48 : vector<8x128xf32>
    %c1_20 = arith.constant 1 : index
    %c0_21 = arith.constant 0 : index
    %c0_22 = arith.constant 0 : index
    %50 = vector.load %arg5[%c1_20, %c0_21, %c0_22] : memref<3x8x128xf32, #tpu.memory_space<vmem>>, vector<1x8x128xf32>
    %51 = vector.shape_cast %50 : vector<1x8x128xf32> to vector<8x128xf32>
    %52 = vector.shape_cast %49 : vector<8x128xf32> to vector<1x8x128xf32>
    tpu.vector_store %arg5[%c1_20, %c0_21, %c0_22], %52 {strides = array<i32>} : memref<3x8x128xf32, #tpu.memory_space<vmem>>, vector<1x8x128xf32>,
    %c2 = arith.constant 2 : index
    %c0_23 = arith.constant 0 : index
    %c0_24 = arith.constant 0 : index
    %53 = vector.load %arg5[%c2, %c0_23, %c0_24] : memref<3x8x128xf32, #tpu.memory_space<vmem>>, vector<1x8x128xf32>
    %54 = vector.shape_cast %53 : vector<1x8x128xf32> to vector<8x128xf32>
    %55 = vector.shape_cast %35 : vector<32x128xf32> to vector<4x8x128xf32>
    %cst_25 = arith.constant dense<0.000000e+00> : vector<8x128xf32>
    %56 = vector.multi_reduction <add>, %55, %cst_25 [0] : vector<4x8x128xf32> to vector<8x128xf32>
    %57 = arith.addf %54, %56 : vector<8x128xf32>
    %c2_26 = arith.constant 2 : index
    %c0_27 = arith.constant 0 : index
    %c0_28 = arith.constant 0 : index
    %58 = vector.load %arg5[%c2_26, %c0_27, %c0_28] : memref<3x8x128xf32, #tpu.memory_space<vmem>>, vector<1x8x128xf32>
    %59 = vector.shape_cast %58 : vector<1x8x128xf32> to vector<8x128xf32>
    %60 = vector.shape_cast %57 : vector<8x128xf32> to vector<1x8x128xf32>
    tpu.vector_store %arg5[%c2_26, %c0_27, %c0_28], %60 {strides = array<i32>} : memref<3x8x128xf32, #tpu.memory_space<vmem>>, vector<1x8x128xf32>,
    return
  }
  func.func @transform_0(%arg0: i32, %arg1: i32) -> i32 {
    %c0_i32 = arith.constant 0 : i32
    %c0_i32_0 = arith.constant 0 : i32
    return %c0_i32 : i32
  }
  func.func @transform_1(%arg0: i32, %arg1: i32) -> (i32, i32) {
    %c1_i32 = arith.constant 1 : i32
    %0 = arith.muli %arg0, %c1_i32 : i32
    %1 = arith.addi %0, %arg1 : i32
    %c0_i32 = arith.constant 0 : i32
    %2 = arith.minsi %1, %c0_i32 : i32
    %c0_i32_0 = arith.constant 0 : i32
    %c0_i32_1 = arith.constant 0 : i32
    return %2, %c0_i32_0 : i32, i32
  }
  func.func @transform_2(%arg0: i32, %arg1: i32) -> (i32, i32) {
    %c1_i32 = arith.constant 1 : i32
    %0 = arith.muli %arg0, %c1_i32 : i32
    %1 = arith.addi %0, %arg1 : i32
    %c0_i32 = arith.constant 0 : i32
    %2 = arith.minsi %1, %c0_i32 : i32
    %c0_i32_0 = arith.constant 0 : i32
    %c0_i32_1 = arith.constant 0 : i32
    return %2, %c0_i32_0 : i32, i32
  }
  func.func @transform_3(%arg0: i32, %arg1: i32) -> (i32, i32, i32) {
    %c0_i32 = arith.constant 0 : i32
    %c0_i32_0 = arith.constant 0 : i32
    %c0_i32_1 = arith.constant 0 : i32
    return %arg0, %c0_i32, %c0_i32_0 : i32, i32, i32
  }
}

</mosaic_0001>

<bundles_post_ra>
// kernel: tpu_custom_call.1
= control target key start
LH: loop header
LB: loop body
LE: loop exit
PB: predicated region body
PF: predicated region fallthrough
CT: control target
= control target key end

     0   :  { %8 = vsyncpa [#allocation5], 0  ;;  %s379_s0 = inlined_call_operand.hbm [shape: f32[2], index: 0, kind: input, shape index: {}]   ;;  %s380_s1 = inlined_call_operand.hbm [shape: f32[32,128], index: 1, kind: input, shape index: {}]   ;;  %s381_s2 = inlined_call_operand.hbm [shape: f32[32,128], index: 2, kind: input, shape index: {}]   ;;  %s382_s3 = inlined_call_operand.hbm [shape: f32[3,8,128], index: 3, kind: output, shape index: {}]  }
   0x1   :  { %9 = vsyncpa [#allocation3], 0 }
   0x2   :  { %10 = vsyncpa [#allocation8], 0 }
   0x3   :  { %11 = vsyncpa [#allocation4], 0  ;;  %s212_s14 = scalar_lea.hbm %s379_s0, 16 }
   0x4   :  { %p213_p0 = scmp.ne.s32.totalorder %s379_s0, %s212_s14  ;;  %p216_p1 = scmp.lt.u32.totalorder %s212_s14, %s379_s0 }
   0x6   :  { %p218_p2 = pnand %p216_p1, %p213_p0 }
   0x8   :  { %221 = shalt.err (!%p218_p2)
}
   0x9   :  { %s296_s19 = smov [#allocation2]   ;;  %s297_s22 = smov [#allocation6]  }
   0xa   :  { %19 = dma.hbm_to_smem %s379_s0, 16, %s296_s19, [#allocation5]  }
   0xb   :  { %s31_s23 = sshll.u32 %s297_s22, 4  ;;  %s222_s26 = scalar_lea.hbm %s380_s1, 512  ;;  %s32_s23 = int_to_ptr.vmem [resolvable:$true] %s31_s23 }
   0xc   :  { %p223_p3 = scmp.ne.s32.totalorder %s380_s1, %s222_s26  ;;  %p226_p4 = scmp.lt.u32.totalorder %s222_s26, %s380_s1 }
   0xe   :  { %p228_p5 = pnand %p226_p4, %p223_p3 }
  0x10   :  { %231 = shalt.err (!%p228_p5)
}
  0x11   :  { %s232_s4 = scalar_lea.vmem %s32_s23, 512  ;;  %p237_p7 = scmp.lt.s32.totalorder %s32_s23, %s32_s23 }
  0x12   :  { %p233_p6 = scmp.ne.s32.totalorder %s32_s23, %s232_s4  ;;  %p238_p8 = scmp.lt.s32.totalorder %s232_s4, %s232_s4 }
  0x14   :  { %p239_p9 = por %p238_p8, %p237_p7 }
  0x16   :  { %p240_p10 = pnand %p239_p9, %p233_p6 }
  0x18   :  { %243 = shalt.err (!%p240_p10)
}
  0x19   :  { %s298_s0 = smov 128   ;;  %s299_s5 = smov 8  }
  0x1a   :  { %37 = dma.hbm_to_vmem [thread:$0]  %s380_s1, 512, %s32_s23, [#allocation3], %s298_s0, %s298_s0, %s299_s5  }
  0x1b   :  { %s300_s8 = smov [#allocation7]   ;;  %s244_s12 = scalar_lea.hbm %s381_s2, 512 }
  0x1c   :  { %s49_s9 = sshll.u32 %s300_s8, 4  ;;  %p245_p11 = scmp.ne.s32.totalorder %s381_s2, %s244_s12  ;;  %s50_s9 = int_to_ptr.vmem [resolvable:$true] %s49_s9 }
  0x1d   :  { %p248_p12 = scmp.lt.u32.totalorder %s244_s12, %s381_s2 }
  0x1f   :  { %p250_p13 = pnand %p248_p12, %p245_p11 }
  0x21   :  { %253 = shalt.err (!%p250_p13)
}
  0x22   :  { %s254_s17 = scalar_lea.vmem %s50_s9, 512  ;;  %p259_p1 = scmp.lt.s32.totalorder %s50_s9, %s50_s9 }
  0x23   :  { %p255_p0 = scmp.ne.s32.totalorder %s50_s9, %s254_s17  ;;  %p260_p2 = scmp.lt.s32.totalorder %s254_s17, %s254_s17 }
  0x25   :  { %p261_p3 = por %p260_p2, %p259_p1 }
  0x27   :  { %p262_p4 = pnand %p261_p3, %p255_p0 }
  0x29   :  { %265 = shalt.err (!%p262_p4)
}
  0x2a   :  { %55 = dma.hbm_to_vmem [thread:$0]  %s381_s2, 512, %s50_s9, [#allocation8], %s298_s0, %s298_s0, %s299_s5  }
  0x2b   :  { %288 = dma.done.wait [#allocation5], 16  }
  0x2c   :  { %289 = vsyncadd [#allocation5], 4294967280 }
  0x2d   :  { %290 = dma.done.wait [#allocation3], 512  }
  0x2e   :  { %291 = vsyncadd [#allocation3], 4294966784 }
  0x2f   :  { %292 = dma.done.wait [#allocation8], 512  }
  0x30   :  { %293 = vsyncadd [#allocation8], 4294966784 }
  0x31   :  { %65 = sfence }
  0x32   :  { %s81_s19 = sld [smem:[#allocation2]]  ;;  %s200_s20 = sld [smem:[#allocation2 + $0x1]]  ;;  %v87_v0 = vld [vmem:[#allocation7] sm:$0xff]  ;;  %v88_v1 = vld [vmem:[#allocation7 + $0x8] sm:$0xff] }
  0x33   :  { %v172_v2 = vadd.f32 %v88_v1, %v87_v0  ;;  %v83_v3 = vld [vmem:[#allocation6] sm:$0xff]  ;;  %v84_v4 = vld [vmem:[#allocation6 + $0x8] sm:$0xff]  ;;  %s301_s2 = smov [#allocation9]  }
  0x34   :  { %s182_s22 = sshll.u32 %s301_s2, 4  ;;  %s183_s22 = int_to_ptr.vmem [resolvable:$true] %s182_s22 }
  0x35   :  { %176 = vst [vmem:[#allocation9 + $0x10] sm:$0xff] %v172_v2  ;;  %s266_s23 = scalar_lea.vmem %s183_s22, 384  ;;  %p271_p6 = scmp.lt.s32.totalorder %s183_s22, %s183_s22 }
  0x36   :  { %p267_p5 = scmp.ne.s32.totalorder %s183_s22, %s266_s23  ;;  %p272_p7 = scmp.lt.s32.totalorder %s266_s23, %s266_s23 }
  0x38   :  { %v91_v5 = vstv %s81_s19  ;;  %s96_s21 = smul.f32 0.5, %s200_s20  ;;  %p273_p8 = por %p272_p7, %p271_p6 }
  0x39   :  { %v92_v6 = vsub.f32 %v83_v3, %v91_v5  ;;  %v93_v7 = vsub.f32 %v84_v4, %v91_v5 }
  0x3a   :  { %v97_v8 = vstv %s96_s21  ;;  %p274_p9 = pnand %p273_p8, %p267_p5 }
  0x3b   :  { %v98_v9 = vmul.f32 %v97_v8, %v92_v6  ;;  %v99_v10 = vmul.f32 %v97_v8, %v93_v7 }
  0x3d   :  { %208 = vtanh.f32 %v98_v9 }
  0x3e   :  { %210 = vtanh.f32 %v99_v10 }
  0x47   :  { %v209_v11 = vpop.eup %208 }
  0x48   :  { %v211_v12 = vpop.eup %210  ;;  %v106_v13 = vmul.f32 0.5, %v209_v11 }
  0x49   :  { %v107_v14 = vmul.f32 0.5, %v211_v12 }
  0x4a   :  { %v110_v15 = vadd.f32 0.5, %v106_v13 }
  0x4b   :  { %v111_v16 = vadd.f32 0.5, %v107_v14 }
  0x4c   :  { %v154_v17 = vmul.f32 %v110_v15, %v87_v0 }
  0x4d   :  { %v155_v18 = vmul.f32 %v111_v16, %v88_v1  ;;  %v165_v19 = vadd.f32 %v111_v16, %v110_v15 }
  0x4f   :  { %v158_v20 = vadd.f32 %v155_v18, %v154_v17  ;;  %169 = vst [vmem:[#allocation9 + $0x8] sm:$0xff] %v165_v19 }
  0x51   :  { %162 = vst [vmem:[#allocation9] sm:$0xff] %v158_v20 }
  0x52   :  { %277 = shalt.err (!%p274_p9)
}
  0x53   :  { %s278_s26 = scalar_lea.hbm %s382_s3, 384 }
  0x54   :  { %p279_p10 = scmp.ne.s32.totalorder %s382_s3, %s278_s26  ;;  %p282_p11 = scmp.lt.u32.totalorder %s278_s26, %s382_s3 }
  0x56   :  { %p284_p12 = pnand %p282_p11, %p279_p10 }
  0x58   :  { %287 = shalt.err (!%p284_p12)
}
  0x59   :  { %188 = dma.vmem_to_hbm [thread:$0]  %s183_s22, 384, %s382_s3, [#allocation4], %s298_s0, %s298_s0, %s299_s5  }
  0x5a   :  { %294 = dma.done.wait [#allocation4], 384  }
  0x5b   :  { %295 = vsyncadd [#allocation4], 4294966912 }
  0x5c   :  { %192 = vsyncpa [#allocation3], 1 }
  0x5d   :  { %193 = vsyncpa [#allocation8], 1 }
  0x5e   :  { %194 = vsyncpa [#allocation4], 1 }
  0x5f   :  { %195 = vsyncpa [#allocation5], 1 }

</bundles_post_ra>
